<compile_context>
chip_gen: v6e
topology: v6e:2x2x1
jax: 0.10.0
libtpu: 0.0.40
codegen_flags: <defaults>
</compile_context>

<pallas_src>
import numpy as np
import jax
import jax.numpy as jnp
from jax.experimental import pallas as pl
from jax.experimental.pallas import tpu as pltpu

EPS = 1e-5
OFF = 16   # interior row offset in the halo scratch; multiple of 16 so bf16
           # (16,128)-tile stores of the staged slabs are unmasked.


def residual_block_kernel(x_ref, w1_ref, b1_ref, g1_ref, be1_ref,
                          w2_ref, b2_ref, g2_ref, be2_ref,
                          sel_ref, selT_ref, out_ref, pad_ref):
    N, H, WC = x_ref.shape
    NH = N * H
    C = sel_ref.shape[1]                      # padded channel count
    W = WC // C
    inv_m = 1.0 / (NH * W)                    # 1 / (N*H*W); padding-invariant

    x_slab = x_ref[...]                       # (N, H, WC) f32
    x_f32 = x_slab.reshape(NH, WC)            # kept f32 for the residual add

    # bf16 H-halo scratch, reused by both convs.  Zero the blocks above/below
    # the interior once with 16-row sublane-aligned (unmasked) stores.
    zero_blk = jnp.zeros((N, OFF, WC), pad_ref.dtype)
    pad_ref[:, 0:OFF, :] = zero_blk
    pad_ref[:, OFF + H:OFF + H + OFF, :] = zero_blk
    pad_ref[:, OFF:OFF + H, :] = x_slab.astype(pad_ref.dtype)

    def conv(w_ref, b_lane):
        # 3x3 conv = 3 accumulating bf16 MXU matmuls (one per row shift dy);
        # dx taps + W-boundary zero padding are folded into the banded weight.
        taps = [
            jnp.dot(pad_ref[:, OFF - 1 + dy:OFF - 1 + dy + H, :].reshape(NH, WC),
                    w_ref[dy * WC:(dy + 1) * WC, :],
                    preferred_element_type=jnp.float32)
            for dy in range(3)
        ]
        return taps[0] + taps[1] + taps[2] + b_lane        # (NH, WC) f32

    def bn_fold(y, g, be):
        # Training-mode BN folded into per-channel scale/shift from one
        # sum / sum-of-squares pass.  The channel gather and the lane scatter
        # are each a single batched selector matmul.
        col = jnp.concatenate([jnp.sum(y, axis=0, keepdims=True),
                               jnp.sum(y * y, axis=0, keepdims=True)],
                              axis=0)                                   # (2, WC)
        ch = jnp.dot(col, sel_ref[...], preferred_element_type=jnp.float32)  # (2, C)
        mean = ch[0:1, :] * inv_m
        var = jnp.maximum(ch[1:2, :] * inv_m - mean * mean, 0.0)        # clamp >= 0
        scale_c = g * jax.lax.rsqrt(var + EPS)                          # (1, C)
        shift_c = be - mean * scale_c
        lane = jnp.dot(jnp.concatenate([scale_c, shift_c], axis=0),
                       selT_ref[...], preferred_element_type=jnp.float32)    # (2, WC)
        return lane[0:1, :], lane[1:2, :]

    # conv1 -> bn1 -> relu   (BN + ReLU fused into one elementwise pass)
    y1 = conv(w1_ref, b1_ref[...])
    s1, t1 = bn_fold(y1, g1_ref[...], be1_ref[...])
    y1 = jnp.maximum(y1 * s1 + t1, 0.0)

    # Restage normalized activations (bf16) for conv2; halo blocks still zero.
    pad_ref[:, OFF:OFF + H, :] = y1.astype(pad_ref.dtype).reshape(N, H, WC)

    # conv2 -> bn2 -> + residual (f32), single lane-dense 128-lane store.
    y2 = conv(w2_ref, b2_ref[...])
    s2, t2 = bn_fold(y2, g2_ref[...], be2_ref[...])
    out_ref[...] = y2 * s2 + t2 + x_f32


def _band_weights(w_oihw, W):
    """PyTorch (Cout, Cin, 3, 3) -> banded (3*W*Cin, W*Cout) weight so that, per
    row shift dy, one matmul over the (W*Cin)-lane slab implements the 3x3 conv
    (including the zero padding at the W boundary)."""
    w = np.asarray(w_oihw, dtype=np.float32)
    Co, Ci, KH, KW = w.shape
    full = np.zeros((KH * W * Ci, W * Co), np.float32)
    for ky in range(KH):
        for kx in range(KW):
            tap = w[:, :, ky, kx].T                     # (Ci, Co)
            for xo in range(W):
                xi = xo + kx - 1
                if 0 <= xi < W:
                    r = ky * W * Ci + xi * Ci
                    full[r:r + Ci, xo * Co:xo * Co + Co] = tap
    return jnp.asarray(full)


def residual_block_pallas(x_nchw, params):
    N, C, H, W = x_nchw.shape

    # Pad channels so the lane dimension W*Cp is a multiple of 128 (lane-dense,
    # unmasked stores).  Padded channels carry zero weights/bias/gamma/beta, so
    # they stay exactly zero through conv/BN/ReLU/residual and are sliced off.
    cp = C
    while (W * cp) % 128 != 0:
        cp += 1
    WC = W * cp

    x_nhwc = jnp.transpose(x_nchw, (0, 2, 3, 1))
    if cp != C:
        x_nhwc = jnp.pad(x_nhwc, ((0, 0), (0, 0), (0, 0), (0, cp - C)))
    x_slab = x_nhwc.reshape(N, H, WC)

    def pad_w(w):
        w = np.asarray(w, np.float32)
        out = np.zeros((cp, cp, 3, 3), np.float32)
        out[:C, :C] = w
        return out

    def pad_vec(v):
        out = np.zeros((cp,), np.float32)
        out[:C] = np.asarray(v, np.float32)
        return out

    w1 = _band_weights(pad_w(params["w1"]), W).astype(jnp.bfloat16)
    w2 = _band_weights(pad_w(params["w2"]), W).astype(jnp.bfloat16)
    b1 = jnp.asarray(np.tile(pad_vec(params["b1"]), W).reshape(1, WC))
    b2 = jnp.asarray(np.tile(pad_vec(params["b2"]), W).reshape(1, WC))
    g1 = jnp.asarray(pad_vec(params["g1"]).reshape(1, cp))
    be1 = jnp.asarray(pad_vec(params["be1"]).reshape(1, cp))
    g2 = jnp.asarray(pad_vec(params["g2"]).reshape(1, cp))
    be2 = jnp.asarray(pad_vec(params["be2"]).reshape(1, cp))

    sel_np = np.tile(np.eye(cp, dtype=np.float32), (W, 1))    # (WC, cp)
    sel = jnp.asarray(sel_np)
    selT = jnp.asarray(np.ascontiguousarray(sel_np.T))        # (cp, WC)

    vmem = pl.BlockSpec(memory_space=pltpu.MemorySpace.VMEM)
    out_slab = pl.pallas_call(
        residual_block_kernel,
        out_shape=jax.ShapeDtypeStruct((N * H, WC), jnp.float32),
        in_specs=[vmem] * 11,
        out_specs=vmem,
        scratch_shapes=[pltpu.VMEM((N, 2 * OFF + H, WC), jnp.bfloat16)],
        compiler_params=pltpu.CompilerParams(
            # Tiny here; explicit so tile sizing stays a conscious choice when
            # gridded for real sizes (v7x has only 64 MiB physical VMEM).
            vmem_limit_bytes=32 * 1024 * 1024),
    )(x_slab, w1, b1, g1, be1, w2, b2, g2, be2, sel, selT)

    out = out_slab.reshape(N, H, W, cp)[..., :C]
    return jnp.transpose(out, (0, 3, 1, 2))


# ---- pure-JAX f32 reference (NCHW, PyTorch training-mode semantics) ----
def residual_block_ref(x, params):
    def conv(h, w, b):
        y = jax.lax.conv_general_dilated(
            h, w, window_strides=(1, 1), padding="SAME",
            dimension_numbers=("NCHW", "OIHW", "NCHW"))
        return y + b[None, :, None, None]

    def bn(h, g, be):
        mean = jnp.mean(h, axis=(0, 2, 3), keepdims=True)
        var = jnp.mean((h - mean) ** 2, axis=(0, 2, 3), keepdims=True)
        return (h - mean) * jax.lax.rsqrt(var + EPS) * g[None, :, None, None] \
               + be[None, :, None, None]

    out = bn(conv(x, params["w1"], params["b1"]), params["g1"], params["be1"])
    out = jnp.maximum(out, 0.0)
    out = bn(conv(out, params["w2"], params["b2"]), params["g2"], params["be2"])
    return out + x


if __name__ == "__main__":
    N, C, H, W = 2, 4, 16, 16
    key = jax.random.PRNGKey(0)
    ks = jax.random.split(key, 9)

    x = jax.random.normal(ks[0], (N, C, H, W), jnp.float32)
    params = {
        "w1": 0.1 * jax.random.normal(ks[1], (C, C, 3, 3), jnp.float32),
        "b1": 0.1 * jax.random.normal(ks[2], (C,), jnp.float32),
        "g1": 1.0 + 0.1 * jax.random.normal(ks[3], (C,), jnp.float32),
        "be1": 0.1 * jax.random.normal(ks[4], (C,), jnp.float32),
        "w2": 0.1 * jax.random.normal(ks[5], (C, C, 3, 3), jnp.float32),
        "b2": 0.1 * jax.random.normal(ks[6], (C,), jnp.float32),
        "g2": 1.0 + 0.1 * jax.random.normal(ks[7], (C,), jnp.float32),
        "be2": 0.1 * jax.random.normal(ks[8], (C,), jnp.float32),
    }

    out = jax.block_until_ready(residual_block_pallas(x, params))
    ref = jax.block_until_ready(residual_block_ref(x, params))

    # Kernel uses bf16 MXU operands (f32 accumulation) vs. the f32 reference,
    # so compare at bf16-appropriate tolerance.
    np.testing.assert_allclose(np.asarray(out), np.asarray(ref),
                               rtol=2e-2, atol=2e-2)
    assert out.shape == (N, C, H, W)
    print("KERNEL_OK")
</pallas_src>

<mosaic_0001>
module attributes {stable_mosaic.version = 11 : i64} {
  func.func @residual_block_kernel(%arg0: memref<2x16x128xf32, #tpu.memory_space<vmem>>, %arg1: memref<384x128xbf16, #tpu.memory_space<vmem>>, %arg2: memref<1x128xf32, #tpu.memory_space<vmem>>, %arg3: memref<1x8xf32, #tpu.memory_space<vmem>>, %arg4: memref<1x8xf32, #tpu.memory_space<vmem>>, %arg5: memref<384x128xbf16, #tpu.memory_space<vmem>>, %arg6: memref<1x128xf32, #tpu.memory_space<vmem>>, %arg7: memref<1x8xf32, #tpu.memory_space<vmem>>, %arg8: memref<1x8xf32, #tpu.memory_space<vmem>>, %arg9: memref<128x8xf32, #tpu.memory_space<vmem>>, %arg10: memref<8x128xf32, #tpu.memory_space<vmem>>, %arg11: memref<32x128xf32, #tpu.memory_space<vmem>>, %arg12: memref<2x48x128xbf16, #tpu.memory_space<vmem>>) attributes {dimension_semantics = [], scalar_prefetch = 0 : i64, scratch_operands = 1 : i64, tpu.core_type = #tpu.core_type<tc>} {
    %c0 = arith.constant 0 : index
    %c0_0 = arith.constant 0 : index
    %c0_1 = arith.constant 0 : index
    %0 = vector.load %arg0[%c0, %c0_0, %c0_1] : memref<2x16x128xf32, #tpu.memory_space<vmem>>, vector<2x16x128xf32>
    %1 = vector.shape_cast %0 : vector<2x16x128xf32> to vector<32x128xf32>
    %cst = arith.constant 0.000000e+00 : bf16
    %2 = vector.broadcast %cst : bf16 to vector<2x16x128xbf16>
    %c0_2 = arith.constant 0 : index
    %c0_3 = arith.constant 0 : index
    %c0_4 = arith.constant 0 : index
    %3 = vector.load %arg12[%c0_2, %c0_3, %c0_4] : memref<2x48x128xbf16, #tpu.memory_space<vmem>>, vector<2x16x128xbf16>
    tpu.vector_store %arg12[%c0_2, %c0_3, %c0_4], %2 {strides = array<i32>} : memref<2x48x128xbf16, #tpu.memory_space<vmem>>, vector<2x16x128xbf16>,
    %c0_5 = arith.constant 0 : index
    %c32 = arith.constant 32 : index
    %c0_6 = arith.constant 0 : index
    %4 = vector.load %arg12[%c0_5, %c32, %c0_6] : memref<2x48x128xbf16, #tpu.memory_space<vmem>>, vector<2x16x128xbf16>
    tpu.vector_store %arg12[%c0_5, %c32, %c0_6], %2 {strides = array<i32>} : memref<2x48x128xbf16, #tpu.memory_space<vmem>>, vector<2x16x128xbf16>,
    %5 = arith.truncf %0 : vector<2x16x128xf32> to vector<2x16x128xbf16>
    %c0_7 = arith.constant 0 : index
    %c16 = arith.constant 16 : index
    %c0_8 = arith.constant 0 : index
    %6 = vector.load %arg12[%c0_7, %c16, %c0_8] : memref<2x48x128xbf16, #tpu.memory_space<vmem>>, vector<2x16x128xbf16>
    tpu.vector_store %arg12[%c0_7, %c16, %c0_8], %5 {strides = array<i32>} : memref<2x48x128xbf16, #tpu.memory_space<vmem>>, vector<2x16x128xbf16>,
    %c0_9 = arith.constant 0 : index
    %c0_10 = arith.constant 0 : index
    %7 = vector.load %arg2[%c0_9, %c0_10] : memref<1x128xf32, #tpu.memory_space<vmem>>, vector<1x128xf32>
    %c0_11 = arith.constant 0 : index
    %c15 = arith.constant 15 : index
    %c0_12 = arith.constant 0 : index
    %8 = vector.load %arg12[%c0_11, %c15, %c0_12] : memref<2x48x128xbf16, #tpu.memory_space<vmem>>, vector<2x16x128xbf16>
    %9 = vector.shape_cast %8 : vector<2x16x128xbf16> to vector<32x128xbf16>
    %c0_13 = arith.constant 0 : index
    %c0_14 = arith.constant 0 : index
    %10 = vector.load %arg1[%c0_13, %c0_14] : memref<384x128xbf16, #tpu.memory_space<vmem>>, vector<128x128xbf16>
    %cst_15 = arith.constant dense<0.000000e+00> : vector<32x128xf32>
    %11 = tpu.matmul %9, %10, %cst_15 {dimension_numbers = #tpu.dot_dimension_numbers<[1], [0], [0], [1], [0, 0, 1, 1], [], []>} : vector<32x128xbf16>, vector<128x128xbf16>, vector<32x128xf32> -> vector<32x128xf32>
    %c0_16 = arith.constant 0 : index
    %c16_17 = arith.constant 16 : index
    %c0_18 = arith.constant 0 : index
    %12 = vector.load %arg12[%c0_16, %c16_17, %c0_18] : memref<2x48x128xbf16, #tpu.memory_space<vmem>>, vector<2x16x128xbf16>
    %13 = vector.shape_cast %12 : vector<2x16x128xbf16> to vector<32x128xbf16>
    %c128 = arith.constant 128 : index
    %c0_19 = arith.constant 0 : index
    %14 = vector.load %arg1[%c128, %c0_19] : memref<384x128xbf16, #tpu.memory_space<vmem>>, vector<128x128xbf16>
    %cst_20 = arith.constant dense<0.000000e+00> : vector<32x128xf32>
    %15 = tpu.matmul %13, %14, %cst_20 {dimension_numbers = #tpu.dot_dimension_numbers<[1], [0], [0], [1], [0, 0, 1, 1], [], []>} : vector<32x128xbf16>, vector<128x128xbf16>, vector<32x128xf32> -> vector<32x128xf32>
    %c0_21 = arith.constant 0 : index
    %c17 = arith.constant 17 : index
    %c0_22 = arith.constant 0 : index
    %16 = vector.load %arg12[%c0_21, %c17, %c0_22] : memref<2x48x128xbf16, #tpu.memory_space<vmem>>, vector<2x16x128xbf16>
    %17 = vector.shape_cast %16 : vector<2x16x128xbf16> to vector<32x128xbf16>
    %c256 = arith.constant 256 : index
    %c0_23 = arith.constant 0 : index
    %18 = vector.load %arg1[%c256, %c0_23] : memref<384x128xbf16, #tpu.memory_space<vmem>>, vector<128x128xbf16>
    %cst_24 = arith.constant dense<0.000000e+00> : vector<32x128xf32>
    %19 = tpu.matmul %17, %18, %cst_24 {dimension_numbers = #tpu.dot_dimension_numbers<[1], [0], [0], [1], [0, 0, 1, 1], [], []>} : vector<32x128xbf16>, vector<128x128xbf16>, vector<32x128xf32> -> vector<32x128xf32>
    %20 = arith.addf %11, %15 : vector<32x128xf32>
    %21 = arith.addf %20, %19 : vector<32x128xf32>
    %22 = vector.broadcast %7 : vector<1x128xf32> to vector<32x128xf32>
    %23 = arith.addf %21, %22 : vector<32x128xf32>
    %c0_25 = arith.constant 0 : index
    %c0_26 = arith.constant 0 : index
    %24 = vector.load %arg3[%c0_25, %c0_26] : memref<1x8xf32, #tpu.memory_space<vmem>>, vector<1x8xf32>
    %c0_27 = arith.constant 0 : index
    %c0_28 = arith.constant 0 : index
    %25 = vector.load %arg4[%c0_27, %c0_28] : memref<1x8xf32, #tpu.memory_space<vmem>>, vector<1x8xf32>
    %cst_29 = arith.constant dense<0.000000e+00> : vector<128xf32>
    %26 = vector.multi_reduction <add>, %23, %cst_29 [0] : vector<32x128xf32> to vector<128xf32>
    %27 = vector.shape_cast %26 : vector<128xf32> to vector<1x128xf32>
    %28 = arith.mulf %23, %23 : vector<32x128xf32>
    %cst_30 = arith.constant dense<0.000000e+00> : vector<128xf32>
    %29 = vector.multi_reduction <add>, %28, %cst_30 [0] : vector<32x128xf32> to vector<128xf32>
    %30 = vector.shape_cast %29 : vector<128xf32> to vector<1x128xf32>
    %31 = tpu.concatenate %27, %30 in 0 : vector<1x128xf32>, vector<1x128xf32> -> vector<2x128xf32>
    %c0_31 = arith.constant 0 : index
    %c0_32 = arith.constant 0 : index
    %32 = vector.load %arg9[%c0_31, %c0_32] : memref<128x8xf32, #tpu.memory_space<vmem>>, vector<128x8xf32>
    %cst_33 = arith.constant dense<0.000000e+00> : vector<2x8xf32>
    %33 = tpu.matmul %31, %32, %cst_33 {dimension_numbers = #tpu.dot_dimension_numbers<[1], [0], [0], [1], [0, 0, 1, 1], [], []>} : vector<2x128xf32>, vector<128x8xf32>, vector<2x8xf32> -> vector<2x8xf32>
    %34 = vector.extract_strided_slice %33 {offsets = [0, 0], sizes = [1, 8], strides = [1, 1]} : vector<2x8xf32> to vector<1x8xf32>
    %cst_34 = arith.constant 0.001953125 : f32
    %35 = vector.broadcast %cst_34 : f32 to vector<1x8xf32>
    %36 = arith.mulf %34, %35 : vector<1x8xf32>
    %37 = vector.extract_strided_slice %33 {offsets = [1, 0], sizes = [1, 8], strides = [1, 1]} : vector<2x8xf32> to vector<1x8xf32>
    %cst_35 = arith.constant 0.001953125 : f32
    %38 = vector.broadcast %cst_35 : f32 to vector<1x8xf32>
    %39 = arith.mulf %37, %38 : vector<1x8xf32>
    %40 = arith.mulf %36, %36 : vector<1x8xf32>
    %41 = arith.subf %39, %40 : vector<1x8xf32>
    %cst_36 = arith.constant 0.000000e+00 : f32
    %42 = vector.broadcast %cst_36 : f32 to vector<1x8xf32>
    %43 = arith.maximumf %41, %42 : vector<1x8xf32>
    %cst_37 = arith.constant 9.99999974E-6 : f32
    %44 = vector.broadcast %cst_37 : f32 to vector<1x8xf32>
    %45 = arith.addf %43, %44 : vector<1x8xf32>
    %46 = math.rsqrt %45 : vector<1x8xf32>
    %47 = arith.mulf %24, %46 : vector<1x8xf32>
    %48 = arith.mulf %36, %47 : vector<1x8xf32>
    %49 = arith.subf %25, %48 : vector<1x8xf32>
    %50 = tpu.concatenate %47, %49 in 0 : vector<1x8xf32>, vector<1x8xf32> -> vector<2x8xf32>
    %c0_38 = arith.constant 0 : index
    %c0_39 = arith.constant 0 : index
    %51 = vector.load %arg10[%c0_38, %c0_39] : memref<8x128xf32, #tpu.memory_space<vmem>>, vector<8x128xf32>
    %cst_40 = arith.constant dense<0.000000e+00> : vector<2x128xf32>
    %52 = tpu.matmul %50, %51, %cst_40 {dimension_numbers = #tpu.dot_dimension_numbers<[1], [0], [0], [1], [0, 0, 1, 1], [], []>} : vector<2x8xf32>, vector<8x128xf32>, vector<2x128xf32> -> vector<2x128xf32>
    %53 = vector.extract_strided_slice %52 {offsets = [0, 0], sizes = [1, 128], strides = [1, 1]} : vector<2x128xf32> to vector<1x128xf32>
    %54 = vector.extract_strided_slice %52 {offsets = [1, 0], sizes = [1, 128], strides = [1, 1]} : vector<2x128xf32> to vector<1x128xf32>
    %55 = vector.broadcast %53 : vector<1x128xf32> to vector<32x128xf32>
    %56 = arith.mulf %23, %55 : vector<32x128xf32>
    %57 = vector.broadcast %54 : vector<1x128xf32> to vector<32x128xf32>
    %58 = arith.addf %56, %57 : vector<32x128xf32>
    %cst_41 = arith.constant 0.000000e+00 : f32
    %59 = vector.broadcast %cst_41 : f32 to vector<32x128xf32>
    %60 = arith.maximumf %58, %59 : vector<32x128xf32>
    %61 = arith.truncf %60 : vector<32x128xf32> to vector<32x128xbf16>
    %62 = vector.shape_cast %61 : vector<32x128xbf16> to vector<2x16x128xbf16>
    %c0_42 = arith.constant 0 : index
    %c16_43 = arith.constant 16 : index
    %c0_44 = arith.constant 0 : index
    %63 = vector.load %arg12[%c0_42, %c16_43, %c0_44] : memref<2x48x128xbf16, #tpu.memory_space<vmem>>, vector<2x16x128xbf16>
    tpu.vector_store %arg12[%c0_42, %c16_43, %c0_44], %62 {strides = array<i32>} : memref<2x48x128xbf16, #tpu.memory_space<vmem>>, vector<2x16x128xbf16>,
    %c0_45 = arith.constant 0 : index
    %c0_46 = arith.constant 0 : index
    %64 = vector.load %arg6[%c0_45, %c0_46] : memref<1x128xf32, #tpu.memory_space<vmem>>, vector<1x128xf32>
    %c0_47 = arith.constant 0 : index
    %c15_48 = arith.constant 15 : index
    %c0_49 = arith.constant 0 : index
    %65 = vector.load %arg12[%c0_47, %c15_48, %c0_49] : memref<2x48x128xbf16, #tpu.memory_space<vmem>>, vector<2x16x128xbf16>
    %66 = vector.shape_cast %65 : vector<2x16x128xbf16> to vector<32x128xbf16>
    %c0_50 = arith.constant 0 : index
    %c0_51 = arith.constant 0 : index
    %67 = vector.load %arg5[%c0_50, %c0_51] : memref<384x128xbf16, #tpu.memory_space<vmem>>, vector<128x128xbf16>
    %cst_52 = arith.constant dense<0.000000e+00> : vector<32x128xf32>
    %68 = tpu.matmul %66, %67, %cst_52 {dimension_numbers = #tpu.dot_dimension_numbers<[1], [0], [0], [1], [0, 0, 1, 1], [], []>} : vector<32x128xbf16>, vector<128x128xbf16>, vector<32x128xf32> -> vector<32x128xf32>
    %c0_53 = arith.constant 0 : index
    %c16_54 = arith.constant 16 : index
    %c0_55 = arith.constant 0 : index
    %69 = vector.load %arg12[%c0_53, %c16_54, %c0_55] : memref<2x48x128xbf16, #tpu.memory_space<vmem>>, vector<2x16x128xbf16>
    %70 = vector.shape_cast %69 : vector<2x16x128xbf16> to vector<32x128xbf16>
    %c128_56 = arith.constant 128 : index
    %c0_57 = arith.constant 0 : index
    %71 = vector.load %arg5[%c128_56, %c0_57] : memref<384x128xbf16, #tpu.memory_space<vmem>>, vector<128x128xbf16>
    %cst_58 = arith.constant dense<0.000000e+00> : vector<32x128xf32>
    %72 = tpu.matmul %70, %71, %cst_58 {dimension_numbers = #tpu.dot_dimension_numbers<[1], [0], [0], [1], [0, 0, 1, 1], [], []>} : vector<32x128xbf16>, vector<128x128xbf16>, vector<32x128xf32> -> vector<32x128xf32>
    %c0_59 = arith.constant 0 : index
    %c17_60 = arith.constant 17 : index
    %c0_61 = arith.constant 0 : index
    %73 = vector.load %arg12[%c0_59, %c17_60, %c0_61] : memref<2x48x128xbf16, #tpu.memory_space<vmem>>, vector<2x16x128xbf16>
    %74 = vector.shape_cast %73 : vector<2x16x128xbf16> to vector<32x128xbf16>
    %c256_62 = arith.constant 256 : index
    %c0_63 = arith.constant 0 : index
    %75 = vector.load %arg5[%c256_62, %c0_63] : memref<384x128xbf16, #tpu.memory_space<vmem>>, vector<128x128xbf16>
    %cst_64 = arith.constant dense<0.000000e+00> : vector<32x128xf32>
    %76 = tpu.matmul %74, %75, %cst_64 {dimension_numbers = #tpu.dot_dimension_numbers<[1], [0], [0], [1], [0, 0, 1, 1], [], []>} : vector<32x128xbf16>, vector<128x128xbf16>, vector<32x128xf32> -> vector<32x128xf32>
    %77 = arith.addf %68, %72 : vector<32x128xf32>
    %78 = arith.addf %77, %76 : vector<32x128xf32>
    %79 = vector.broadcast %64 : vector<1x128xf32> to vector<32x128xf32>
    %80 = arith.addf %78, %79 : vector<32x128xf32>
    %c0_65 = arith.constant 0 : index
    %c0_66 = arith.constant 0 : index
    %81 = vector.load %arg7[%c0_65, %c0_66] : memref<1x8xf32, #tpu.memory_space<vmem>>, vector<1x8xf32>
    %c0_67 = arith.constant 0 : index
    %c0_68 = arith.constant 0 : index
    %82 = vector.load %arg8[%c0_67, %c0_68] : memref<1x8xf32, #tpu.memory_space<vmem>>, vector<1x8xf32>
    %cst_69 = arith.constant dense<0.000000e+00> : vector<128xf32>
    %83 = vector.multi_reduction <add>, %80, %cst_69 [0] : vector<32x128xf32> to vector<128xf32>
    %84 = vector.shape_cast %83 : vector<128xf32> to vector<1x128xf32>
    %85 = arith.mulf %80, %80 : vector<32x128xf32>
    %cst_70 = arith.constant dense<0.000000e+00> : vector<128xf32>
    %86 = vector.multi_reduction <add>, %85, %cst_70 [0] : vector<32x128xf32> to vector<128xf32>
    %87 = vector.shape_cast %86 : vector<128xf32> to vector<1x128xf32>
    %88 = tpu.concatenate %84, %87 in 0 : vector<1x128xf32>, vector<1x128xf32> -> vector<2x128xf32>
    %c0_71 = arith.constant 0 : index
    %c0_72 = arith.constant 0 : index
    %89 = vector.load %arg9[%c0_71, %c0_72] : memref<128x8xf32, #tpu.memory_space<vmem>>, vector<128x8xf32>
    %cst_73 = arith.constant dense<0.000000e+00> : vector<2x8xf32>
    %90 = tpu.matmul %88, %89, %cst_73 {dimension_numbers = #tpu.dot_dimension_numbers<[1], [0], [0], [1], [0, 0, 1, 1], [], []>} : vector<2x128xf32>, vector<128x8xf32>, vector<2x8xf32> -> vector<2x8xf32>
    %91 = vector.extract_strided_slice %90 {offsets = [0, 0], sizes = [1, 8], strides = [1, 1]} : vector<2x8xf32> to vector<1x8xf32>
    %cst_74 = arith.constant 0.001953125 : f32
    %92 = vector.broadcast %cst_74 : f32 to vector<1x8xf32>
    %93 = arith.mulf %91, %92 : vector<1x8xf32>
    %94 = vector.extract_strided_slice %90 {offsets = [1, 0], sizes = [1, 8], strides = [1, 1]} : vector<2x8xf32> to vector<1x8xf32>
    %cst_75 = arith.constant 0.001953125 : f32
    %95 = vector.broadcast %cst_75 : f32 to vector<1x8xf32>
    %96 = arith.mulf %94, %95 : vector<1x8xf32>
    %97 = arith.mulf %93, %93 : vector<1x8xf32>
    %98 = arith.subf %96, %97 : vector<1x8xf32>
    %cst_76 = arith.constant 0.000000e+00 : f32
    %99 = vector.broadcast %cst_76 : f32 to vector<1x8xf32>
    %100 = arith.maximumf %98, %99 : vector<1x8xf32>
    %cst_77 = arith.constant 9.99999974E-6 : f32
    %101 = vector.broadcast %cst_77 : f32 to vector<1x8xf32>
    %102 = arith.addf %100, %101 : vector<1x8xf32>
    %103 = math.rsqrt %102 : vector<1x8xf32>
    %104 = arith.mulf %81, %103 : vector<1x8xf32>
    %105 = arith.mulf %93, %104 : vector<1x8xf32>
    %106 = arith.subf %82, %105 : vector<1x8xf32>
    %107 = tpu.concatenate %104, %106 in 0 : vector<1x8xf32>, vector<1x8xf32> -> vector<2x8xf32>
    %c0_78 = arith.constant 0 : index
    %c0_79 = arith.constant 0 : index
    %108 = vector.load %arg10[%c0_78, %c0_79] : memref<8x128xf32, #tpu.memory_space<vmem>>, vector<8x128xf32>
    %cst_80 = arith.constant dense<0.000000e+00> : vector<2x128xf32>
    %109 = tpu.matmul %107, %108, %cst_80 {dimension_numbers = #tpu.dot_dimension_numbers<[1], [0], [0], [1], [0, 0, 1, 1], [], []>} : vector<2x8xf32>, vector<8x128xf32>, vector<2x128xf32> -> vector<2x128xf32>
    %110 = vector.extract_strided_slice %109 {offsets = [0, 0], sizes = [1, 128], strides = [1, 1]} : vector<2x128xf32> to vector<1x128xf32>
    %111 = vector.extract_strided_slice %109 {offsets = [1, 0], sizes = [1, 128], strides = [1, 1]} : vector<2x128xf32> to vector<1x128xf32>
    %112 = vector.broadcast %110 : vector<1x128xf32> to vector<32x128xf32>
    %113 = arith.mulf %80, %112 : vector<32x128xf32>
    %114 = vector.broadcast %111 : vector<1x128xf32> to vector<32x128xf32>
    %115 = arith.addf %113, %114 : vector<32x128xf32>
    %116 = arith.addf %115, %1 : vector<32x128xf32>
    %c0_81 = arith.constant 0 : index
    %c0_82 = arith.constant 0 : index
    %117 = vector.load %arg11[%c0_81, %c0_82] : memref<32x128xf32, #tpu.memory_space<vmem>>, vector<32x128xf32>
    tpu.vector_store %arg11[%c0_81, %c0_82], %116 {strides = array<i32>} : memref<32x128xf32, #tpu.memory_space<vmem>>, vector<32x128xf32>,
    return
  }
}

</mosaic_0001>

<bundles_post_ra>
// kernel: tpu_custom_call.1
= control target key start
LH: loop header
LB: loop body
LE: loop exit
PB: predicated region body
PF: predicated region fallthrough
CT: control target
= control target key end

     0   :  { %16 = vsyncpa [#allocation4], 0  ;;  %s2553_s0 = inlined_call_operand.vmem [shape: f32[2,16,128], index: 0, kind: input, shape index: {}]   ;;  %s2554_s1 = inlined_call_operand.hbm [shape: bf16[384,128], index: 1, kind: input, shape index: {}]   ;;  %s2555_s2 = inlined_call_operand.vmem [shape: f32[1,128], index: 2, kind: input, shape index: {}]   ;;  %s2556_s3 = inlined_call_operand.vmem [shape: f32[1,8], index: 3, kind: input, shape index: {}]   ;;  %s2557_s4 = inlined_call_operand.vmem [shape: f32[1,8], index: 4, kind: input, shape index: {}]   ;;  %s2558_s5 = inlined_call_operand.hbm [shape: bf16[384,128], index: 5, kind: input, shape index: {}]   ;;  %s2559_s6 = inlined_call_operand.vmem [shape: f32[1,128], index: 6, kind: input, shape index: {}]   ;;  %s2560_s7 = inlined_call_operand.vmem [shape: f32[1,8], index: 7, kind: input, shape index: {}]   ;;  %s2561_s8 = inlined_call_operand.vmem [shape: f32[1,8], index: 8, kind: input, shape index: {}]   ;;  %s2562_s9 = inlined_call_operand.vmem [shape: f32[128,8], index: 9, kind: input, shape index: {}]   ;;  %s2563_s10 = inlined_call_operand.vmem [shape: f32[8,128], index: 10, kind: input, shape index: {}]   ;;  %s2564_s11 = inlined_call_operand.hbm [shape: f32[32,128], index: 11, kind: output, shape index: {}]  }
   0x1   :  { %17 = vsyncpa [#allocation7], 0 }
   0x2   :  { %18 = vsyncpa [#allocation5], 0  ;;  %s2147_s17 = smov [#allocation3]  }
   0x3   :  { %s26_s18 = sshll.u32 %s2147_s17, 4  ;;  %s27_s18 = int_to_ptr.vmem [resolvable:$true] %s26_s18 }
   0x4   :  { %s2089_s19 = scalar_lea.vmem %s27_s18, 3072  ;;  %p2094_p1 = scmp.lt.s32.totalorder %s27_s18, %s27_s18 }
   0x5   :  { %p2090_p0 = scmp.ne.s32.totalorder %s27_s18, %s2089_s19  ;;  %p2095_p2 = scmp.lt.s32.totalorder %s2089_s19, %s2089_s19 }
   0x7   :  { %p2096_p3 = por %p2095_p2, %p2094_p1 }
   0x9   :  { %p2097_p4 = pnand %p2096_p3, %p2090_p0 }
   0xb   :  { %2100 = shalt.err (!%p2097_p4)
}
   0xc   :  { %s2148_s20 = smov 64   ;;  %s2149_s21 = smov 4  }
   0xd   :  { %32 = dma.hbm_to_vmem [thread:$0]  %s2554_s1, 3072, %s27_s18, [#allocation4], %s2148_s20, %s2148_s20, %s2149_s21  }
   0xe   :  { %s2150_s24 = smov [#allocation6]  }
   0xf   :  { %s44_s25 = sshll.u32 %s2150_s24, 4  ;;  %s45_s25 = int_to_ptr.vmem [resolvable:$true] %s44_s25 }
  0x10   :  { %s2109_s26 = scalar_lea.vmem %s45_s25, 3072  ;;  %p2114_p6 = scmp.lt.s32.totalorder %s45_s25, %s45_s25 }
  0x11   :  { %p2110_p5 = scmp.ne.s32.totalorder %s45_s25, %s2109_s26  ;;  %p2115_p7 = scmp.lt.s32.totalorder %s2109_s26, %s2109_s26 }
  0x13   :  { %p2116_p8 = por %p2115_p7, %p2114_p6 }
  0x15   :  { %p2117_p9 = pnand %p2116_p8, %p2110_p5 }
  0x17   :  { %2120 = shalt.err (!%p2117_p9)
}
  0x18   :  { %50 = dma.hbm_to_vmem [thread:$0]  %s2558_s5, 3072, %s45_s25, [#allocation7], %s2148_s20, %s2148_s20, %s2149_s21  }
  0x19   :  { %2141 = dma.done.wait [#allocation4], 3072  }
  0x1a   :  { %2142 = vsyncadd [#allocation4], 4294964224 }
  0x1b   :  { %2143 = dma.done.wait [#allocation7], 3072  }
  0x1c   :  { %2144 = vsyncadd [#allocation7], 4294964224  ;;  %v2151_v0 = vmov 0   ;;  %v2021_v1 = vld [vmem:[#allocation3 + $0x78] sm:$0xff]   ;;  %v2022_v2 = vld [vmem:[#allocation3 + $0x70] sm:$0xff]   ;;  %vm2153_vm6 = vmmov 0  }
  0x1d   :  { %76 = vst [vmem:[#allocation2 + $0x10] sm:$0xf] %v2151_v0  ;;  %73 = vst [vmem:[#allocation2 + $0x4] sm:$0xf] %v2151_v0  ;;  %1810 = vmatprep.subr.bf16.mxu0 %v2021_v1  ;;  %v2023_v3 = vld [vmem:[#allocation3 + $0x68] sm:$0xff]   ;;  %v2024_v4 = vld [vmem:[#allocation3 + $0x60] sm:$0xff]  }
  0x1e   :  { %75 = vst [vmem:[#allocation2 + $0x1c] sm:$0xf] %v2151_v0  ;;  %78 = vst [vmem:[#allocation2 + $0x28] sm:$0xf] %v2151_v0  ;;  %1811 = vmatpush3.bf16.msra.mxu0 %v2021_v1  ;;  %v2029_v5 = vld [vmem:[#allocation3 + $0xb8] sm:$0xff]   ;;  %v68_v6 = vld [vmem:[%s2553_s0] sm:$0xff] }
  0x1f   :  { %1812 = vmatprep.subr.bf16.mxu0 %v2022_v2  ;;  %v69_v7 = vld [vmem:[%s2553_s0 + $0x8] sm:$0xff]  ;;  %v70_v8 = vld [vmem:[%s2553_s0 + $0x10] sm:$0xff]  ;;  %1830 = vmatprep.subr.bf16.mxu1 %v2029_v5  ;;  %v71_v10 = vld [vmem:[%s2553_s0 + $0x18] sm:$0xff]  ;;  %vm107_vm0 = vsmask.f32 256  ;;  %vm616_vm7 = vcmask 1040384  }
  0x20   :  { %v1691_v9 = vpack.c.bf16 %v69_v7, %v68_v6  ;;  %1831 = vmatpush3.bf16.msra.mxu1 %v2029_v5  ;;  %v1696_v11 = vpack.c.bf16 %v71_v10, %v70_v8  ;;  %v2032_v12 = vld [vmem:[#allocation3 + $0xb0] sm:$0xff]   ;;  %v2025_v13 = vld [vmem:[#allocation3 + $0x58] sm:$0xff]   ;;  %v2034_v14 = vld [vmem:[#allocation3 + $0xa8] sm:$0xff]   ;;  %vm108_vm1 = vsmask.f32 4368  ;;  %vm741_vm8 = vcmask 64512  }
  0x21   :  { %1832 = vmatprep.subr.bf16.mxu1 %v2032_v12  ;;  %v2026_v15 = vld [vmem:[#allocation3 + $0x50] sm:$0xff]   ;;  %v2036_v16 = vld [vmem:[#allocation3 + $0xa0] sm:$0xff]   ;;  %v2027_v19 = vld [vmem:[#allocation3 + $0x48] sm:$0xff]   ;;  %vm301_vm2 = vsmask.f32 3328 }
  0x22   :  { %1813 = vmatpush3.bf16.msra.mxu0 %v2022_v2  ;;  %1708 = vst [vmem:[#allocation2 + $0x8] sm:$0xff] %v1691_v9   ;;  %1709 = vst [vmem:[#allocation2 + $0x20] sm:$0xff] %v1696_v11   ;;  %v2038_v23 = vld [vmem:[#allocation3 + $0x98] sm:$0xff]   ;;  %v2028_v24 = vld [vmem:[#allocation3 + $0x40] sm:$0xff]   ;;  %vm302_vm3 = vsmask.f32 7440 }
  0x23   :  { %1814 = vmatprep.subr.bf16.mxu0 %v2023_v3  ;;  %v2040_v28 = vld [vmem:[#allocation3 + $0x90] sm:$0xff]   ;;  %v2033_v33 = vld [vmem:[#allocation3 + $0x38] sm:$0xff]   ;;  %v2042_v36 = vld [vmem:[#allocation3 + $0x88] sm:$0xff]  }
  0x24   :  { %1833 = vmatpush3.bf16.msra.mxu1 %v2032_v12  ;;  %v297_v39 = vld [vmem:[#allocation2 + $0x10] sm:$0x1]  ;;  %v2035_v50 = vld [vmem:[#allocation3 + $0x30] sm:$0xff]   ;;  %vm2250_vm4 = vmor %vm107_vm0, %vm108_vm1 }
  0x25   :  { %1834 = vmatprep.subr.bf16.mxu1 %v2034_v14  ;;  %v324_v44 = vshll.u32 %v297_v39, 16  ;;  %v300_v55 = vld [vmem:[#allocation2 + $0x28] sm:$0x1]  ;;  %v101_v0 = vld [vmem:[#allocation2 + $0x4] sm:$0x8]  ;;  %v2044_v2 = vld [vmem:[#allocation3 + $0x80] sm:$0xff]  }
  0x26   :  { %1815 = vmatpush3.bf16.msra.mxu0 %v2023_v3  ;;  %v348_v63 = vshll.u32 %v300_v55, 16  ;;  %vm2256_vm5 = vmor %vm301_vm2, %vm302_vm3  ;;  %v111_v7 = vshrl.u32 %v101_v0, 16  ;;  %v2037_v9 = vld [vmem:[#allocation3 + $0x28] sm:$0xff]   ;;  %v2347_v55 = vld [vmem:[%s2562_s9 + $0x30] sm:$0xff] }
  0x27   :  { %1816 = vmatprep.subr.bf16.mxu0 %v2024_v4  ;;  %v326_v56 = vrot.slane %v324_v44, 5  ;;  %v2071_v3 = vld [vmem:[#allocation6 + $0x8] sm:$0xff]  }
  0x28   :  { %1835 = vmatpush3.bf16.msra.mxu1 %v2034_v14  ;;  %v350_v14 = vrot.slane %v348_v63, 5 }
  0x29   :  { %v102_v17 = vld [vmem:[#allocation2 + $0x8] sm:$0xf]  ;;  %v103_v18 = vld [vmem:[#allocation2 + $0xc] sm:$0xf]  ;;  %1836 = vmatprep.subr.bf16.mxu1 %v2036_v16  ;;  %v2236_v27 = vld [vmem:[#allocation2 + $0x20] sm:$0xf] }
  0x2a   :  { %1817 = vmatpush3.bf16.msra.mxu0 %v2024_v4  ;;  %v116_v20 = vshrl.u32 %v102_v17, 16  ;;  %v125_v21 = vshrl.u32 %v103_v18, 16  ;;  %v1610_v22 = vcombine.low %v102_v17, %v103_v18  ;;  %v119_v25 = vshll.u32 %v102_v17, 16  ;;  %v2238_v29 = vld [vmem:[#allocation2 + $0x24] sm:$0xf] }
  0x2b   :  { %1818 = vmatprep.subr.bf16.mxu0 %v2025_v13  ;;  %v128_v26 = vshll.u32 %v103_v18, 16  ;;  %v138_v32 = vshrl.u32 %v2236_v27, 16  ;;  %v141_v34 = vshll.u32 %v2236_v27, 16  ;;  %v1611_v35 = vcombine.low %v2236_v27, %v2238_v29  ;;  %v295_v37 = vld [vmem:[#allocation2 + $0x8] sm:$0xf]  ;;  %v2286_v27 = vld [vmem:[%s2562_s9 + $0x78] sm:$0xff] }
  0x2c   :  { %1826 = vmatprep.mubr.bf16.mxu0 %v1610_v22  ;;  %1837 = vmatpush3.bf16.msra.mxu1 %v2036_v16  ;;  %v2240_v30 = vrot.slane %v116_v20, 7  ;;  %v127_v31 = vrot.slane %v125_v21, 7  ;;  %v296_v38 = vld [vmem:[#allocation2 + $0xc] sm:$0xf]  ;;  %v305_v40 = vshrl.u32 %v295_v37, 16  ;;  %v308_v41 = vshll.u32 %v295_v37, 16 }
  0x2d   :  { %1838 = vmatprep.subr.bf16.mxu1 %v2038_v23  ;;  %v314_v42 = vshll.u32 %v296_v38, 16  ;;  %v318_v43 = vshrl.u32 %v296_v38, 16  ;;  %v298_v45 = vld [vmem:[#allocation2 + $0x20] sm:$0xf]  ;;  %v299_v46 = vld [vmem:[#allocation2 + $0x24] sm:$0xf] }
  0x2e   :  { %1819 = vmatpush3.bf16.msra.mxu0 %v2025_v13  ;;  %v121_v47 = vor.u32 %v119_v25, %v2240_v30  ;;  %v123_v48 = vrot.slane %v2240_v30, 4  ;;  %v130_v49 = vor.u32 %v128_v26, %v127_v31  ;;  %v307_v51 = vrot.slane %v305_v40, 4  ;;  %v2039_v25 = vld [vmem:[#allocation3 + $0x20] sm:$0xff]   ;;  %v2045_v38 = vld [vmem:[#allocation3 + $0x8] sm:$0xff]  }
  0x2f   :  { %1820 = vmatprep.subr.bf16.mxu0 %v2026_v15  ;;  %v310_v52 = vrot.slane %v308_v41, 5  ;;  %v316_v53 = vrot.slane %v314_v42, 5  ;;  %v320_v54 = vrot.slane %v318_v43, 4  ;;  %v329_v57 = vshrl.u32 %v298_v45, 16  ;;  %v2046_v43 = vld [vmem:[#allocation3] sm:$0xff]  }
  0x30   :  { %1839 = vmatpush3.bf16.msra.mxu1 %v2038_v23  ;;  %v332_v58 = vshll.u32 %v298_v45, 16  ;;  %v338_v59 = vshll.u32 %v299_v46, 16  ;;  %v342_v62 = vshrl.u32 %v299_v46, 16  ;;  %v147_v8 = vshrl.u32 %v2238_v29, 16 }
  0x31   :  { %1840 = vmatprep.subr.bf16.mxu1 %v2040_v28  ;;  %v311_v60 = vor.u32 %v310_v52, %v307_v51  ;;  %v321_v61 = vor.u32 %v320_v54, %v316_v53  ;;  %v331_v4 = vrot.slane %v329_v57, 4  ;;  %v131_v16 = vsel %vm2250_vm4, %v123_v48, %v130_v49  ;;  %v2300_v48 = vld [vmem:[%s2562_s9 + $0x68] sm:$0xff]  ;;  %v2307_v49 = vld [vmem:[%s2562_s9 + $0x60] sm:$0xff]  ;;  %v2321_v51 = vld [vmem:[%s2562_s9 + $0x50] sm:$0xff] }
  0x32   :  { %1821 = vmatpush3.bf16.msra.mxu0 %v2026_v15  ;;  %v334_v5 = vrot.slane %v332_v58, 5  ;;  %v340_v6 = vrot.slane %v338_v59, 5  ;;  %v344_v12 = vrot.slane %v342_v62, 4  ;;  %v1608_v15 = vrot.slane %v111_v7, 11  ;;  %v2328_v52 = vld [vmem:[%s2562_s9 + $0x48] sm:$0xff]  ;;  %v2341_v54 = vld [vmem:[%s2562_s9 + $0x38] sm:$0xff] }
  0x33   :  { %1822 = vmatprep.subr.bf16.mxu0 %v2027_v19  ;;  %v312_v10 = vrot.slane %v311_v60, 4  ;;  %v322_v11 = vrot.slane %v321_v61, 4  ;;  %v150_v20 = vshll.u32 %v2238_v29, 16  ;;  %v2363_v57 = vld [vmem:[%s2562_s9 + $0x20] sm:$0xff]  ;;  %v2370_v58 = vld [vmem:[%s2562_s9 + $0x18] sm:$0xff]  ;;  %v2377_v59 = vld [vmem:[%s2562_s9 + $0x10] sm:$0xff] }
  0x34   :  { %1841 = vmatpush3.bf16.msra.mxu1 %v2040_v28  ;;  %v335_v13 = vor.u32 %v334_v5, %v331_v4  ;;  %v122_v23 = vsel %vm2250_vm4, %v1608_v15, %v121_v47  ;;  %v2152_v47 = vmov 0.0   ;;  %v2384_v60 = vld [vmem:[%s2562_s9 + $0x8] sm:$0xff]  ;;  %v2391_v61 = vld [vmem:[%s2562_s9] sm:$0xff] }
  0x35   :  { %1842 = vmatprep.subr.bf16.mxu1 %v2042_v36  ;;  %v317_v17 = vsel %vm2256_vm5, %v312_v10, %v316_v53  ;;  %v327_v18 = vsel %vm2256_vm5, %v322_v11, %v326_v56  ;;  %v1630_v28 = vcombine.low %v122_v23, %v131_v16  ;;  %v2335_v53 = vld [vmem:[%s2562_s9 + $0x40] sm:$0xff]  ;;  %v2356_v56 = vld [vmem:[%s2562_s9 + $0x28] sm:$0xff] }
  0x36   :  { %1823 = vmatpush3.bf16.msra.mxu0 %v2027_v19  ;;  %v345_v19 = vor.u32 %v344_v12, %v340_v6  ;;  %v1620_v21 = vcombine.low %v317_v17, %v327_v18  ;;  %v336_v22 = vrot.slane %v335_v13, 4  ;;  %v1640_v17 = vld [vmem:[%s2555_s2] ss:$0 sm:$0xff] }
  0x37   :  { %1824 = vmatprep.subr.bf16.mxu0 %v2028_v24 }
  0x38   :  { %1843 = vmatpush3.bf16.msra.mxu1 %v2042_v36  ;;  %v346_v26 = vrot.slane %v345_v19, 4  ;;  %1846 = vmatprep.mubr.bf16.mxu1 %v1620_v21  ;;  %v341_v30 = vsel %vm2256_vm5, %v336_v22, %v340_v6  ;;  %v149_v36 = vrot.slane %v147_v8, 7 }
  0x39   :  { %1844 = vmatprep.subr.bf16.mxu1 %v2044_v2 }
  0x3a   :  { %1825 = vmatpush3.bf16.msra.mxu0 %v2028_v24  ;;  %v140_v24 = vrot.slane %v138_v32, 7  ;;  %v351_v29 = vsel %vm2256_vm5, %v346_v26, %v350_v14  ;;  %v2043_v32 = vld [vmem:[#allocation3 + $0x10] sm:$0xff]   ;;  %v152_v42 = vor.u32 %v150_v20, %v149_v36 }
  0x3b   :  { %1850 = vmatprep.subr.bf16.mxu0 %v2033_v33  ;;  %v1621_v31 = vcombine.low %v341_v30, %v351_v29 }
  0x3c   :  { %1845 = vmatpush3.bf16.msra.mxu1 %v2044_v2  ;;  %v143_v40 = vor.u32 %v141_v34, %v140_v24  ;;  %v145_v41 = vrot.slane %v140_v24, 4  ;;  %v2293_v34 = vld [vmem:[%s2562_s9 + $0x70] sm:$0xff] }
  0x3d   :  { %1827 = vmatmul.mubr.bf16.vlgmr.msra.gmra.mxu0 %v1611_v35  ;;  %v104_v35 = vld [vmem:[#allocation2 + $0x1c] sm:$0x8]  ;;  %1870 = vmatprep.subr.mxu1 %v2152_v47 }
  0x3e   :  { %1851 = vmatpush3.bf16.msra.mxu0 %v2033_v33  ;;  %1866 = vmatprep.mubr.bf16.mxu0 %v1630_v28  ;;  %v2041_v33 = vld [vmem:[#allocation3 + $0x18] sm:$0xff]   ;;  %v133_v37 = vshrl.u32 %v104_v35, 16  ;;  %v153_v45 = vsel %vm2250_vm4, %v145_v41, %v152_v42 }
  0x3f   :  { %1852 = vmatprep.subr.bf16.mxu0 %v2035_v50  ;;  %1847 = vmatmul.mubr.bf16.vlgmr.msra.gmra.mxu1 %v1621_v31 }
  0x40   :  { %v1609_v39 = vrot.slane %v133_v37, 11  ;;  %1871 = vmatpush3.msra.mxu1 %v2286_v27  ;;  %1902 = vmatprep.mubr.msk.f32.mxu1 %vm2153_vm6, %v2152_v47 }
  0x41   :  { %1872 = vmatprep.subr.mxu1 %v2152_v47 }
  0x42   :  { %1853 = vmatpush3.bf16.msra.mxu0 %v2035_v50  ;;  %v144_v44 = vsel %vm2250_vm4, %v1609_v39, %v143_v40  ;;  %1873 = vmatpush3.msra.mxu1 %v2293_v34  ;;  %v2314_v50 = vld [vmem:[%s2562_s9 + $0x58] sm:$0xff] }
  0x43   :  { %1854 = vmatprep.subr.bf16.mxu0 %v2037_v9  ;;  %v1631_v46 = vcombine.low %v144_v44, %v153_v45  ;;  %1874 = vmatprep.subr.mxu1 %v2152_v47 }
  0x44   :  { %1875 = vmatpush3.msra.mxu1 %v2300_v48 }
  0x45   :  { %1876 = vmatprep.subr.mxu1 %v2152_v47 }
  0x46   :  { %1855 = vmatpush3.bf16.msra.mxu0 %v2037_v9  ;;  %1877 = vmatpush3.msra.mxu1 %v2307_v49 }
  0x47   :  { %1856 = vmatprep.subr.bf16.mxu0 %v2039_v25  ;;  %1878 = vmatprep.subr.mxu1 %v2152_v47 }
  0x48   :  { %1879 = vmatpush3.msra.mxu1 %v2314_v50 }
  0x49   :  { %1880 = vmatprep.subr.mxu1 %v2152_v47 }
  0x4a   :  { %1857 = vmatpush3.bf16.msra.mxu0 %v2039_v25  ;;  %1881 = vmatpush3.msra.mxu1 %v2321_v51 }
  0x4b   :  { %1858 = vmatprep.subr.bf16.mxu0 %v2041_v33  ;;  %1882 = vmatprep.subr.mxu1 %v2152_v47 }
  0x4c   :  { %1883 = vmatpush3.msra.mxu1 %v2328_v52 }
  0x4d   :  { %1884 = vmatprep.subr.mxu1 %v2152_v47 }
  0x4e   :  { %1859 = vmatpush3.bf16.msra.mxu0 %v2041_v33  ;;  %1885 = vmatpush3.msra.mxu1 %v2335_v53 }
  0x4f   :  { %1860 = vmatprep.subr.bf16.mxu0 %v2043_v32  ;;  %1886 = vmatprep.subr.mxu1 %v2152_v47 }
  0x50   :  { %1887 = vmatpush3.msra.mxu1 %v2341_v54 }
  0x51   :  { %1888 = vmatprep.subr.mxu1 %v2152_v47 }
  0x52   :  { %1861 = vmatpush3.bf16.msra.mxu0 %v2043_v32  ;;  %1889 = vmatpush3.msra.mxu1 %v2347_v55 }
  0x53   :  { %1862 = vmatprep.subr.bf16.mxu0 %v2045_v38  ;;  %1890 = vmatprep.subr.mxu1 %v2152_v47 }
  0x54   :  { %1891 = vmatpush3.msra.mxu1 %v2356_v56 }
  0x55   :  { %1892 = vmatprep.subr.mxu1 %v2152_v47 }
  0x56   :  { %1863 = vmatpush3.bf16.msra.mxu0 %v2045_v38  ;;  %1893 = vmatpush3.msra.mxu1 %v2363_v57 }
  0x57   :  { %1864 = vmatprep.subr.bf16.mxu0 %v2046_v43  ;;  %1894 = vmatprep.subr.mxu1 %v2152_v47 }
  0x58   :  { %1895 = vmatpush3.msra.mxu1 %v2370_v58 }
  0x59   :  { %1896 = vmatprep.subr.mxu1 %v2152_v47 }
  0x5a   :  { %1865 = vmatpush3.bf16.msra.mxu0 %v2046_v43  ;;  %1897 = vmatpush3.msra.mxu1 %v2377_v59 }
  0x5b   :  { %1898 = vmatprep.subr.mxu1 %v2152_v47 }
  0x5c   :  { %1899 = vmatpush3.msra.mxu1 %v2384_v60 }
  0x5d   :  { %1867 = vmatmul.mubr.bf16.vlgmr.msra.gmra.mxu0 %v1631_v46  ;;  %1900 = vmatprep.subr.mxu1 %v2152_v47 }
  0x5e   :  { %1901 = vmatpush3.msra.mxu1 %v2391_v61 }
  0x5f   :  { %1905 = vmatprep.subr.mxu1 %v2152_v47 }
  0xfd   :  { %v1828_v62 = vpop.f32.mrf.mxu0 }
  0xff   :  { %v280_v63 = vpop.f32.mrf.mxu0  ;;  %v1848_v2 = vpop.f32.mrf.mxu1 }
 0x101   :  { %v1829_v0 = vpop.f32.mrf.mxu0  ;;  %v458_v5 = vpop.f32.mrf.mxu1 }
 0x103   :  { %v283_v4 = vpop.f32.mrf.mxu0  ;;  %v1849_v10 = vpop.f32.mrf.mxu1 }
 0x105   :  { %v461_v18 = vpop.f32.mrf.mxu1 }
 0x11d   :  { %v1868_v6 = vpop.f32.mrf.mxu0 }
 0x11e   :  { %v572_v8 = vadd.f32 %v1868_v6, %v1828_v62  ;;  %v2050_v6 = vld [vmem:[#allocation6 + $0xb8] sm:$0xff]  }
 0x11f   :  { %v563_v7 = vpop.f32.mrf.mxu0 }
 0x120   :  { %v564_v9 = vadd.f32 %v563_v7, %v280_v63  ;;  %v580_v15 = vadd.f32 %v1848_v2, %v572_v8  ;;  %v2426_v2 = vld [vmem:[%s2563_s10] sm:$0xff]  ;;  %v2049_v7 = vld [vmem:[#allocation6 + $0x68] sm:$0xff]  }
 0x121   :  { %v1869_v11 = vpop.f32.mrf.mxu0 }
 0x122   :  { %v578_v12 = vadd.f32 %v564_v9, %v458_v5  ;;  %v575_v13 = vadd.f32 %v1869_v11, %v1829_v0  ;;  %v2402_v22 = vadd.f32 %v1640_v17, %v580_v15  ;;  %v2048_v5 = vld [vmem:[#allocation6 + $0x70] sm:$0xff]  }
 0x123   :  { %v566_v14 = vpop.f32.mrf.mxu0 }
 0x124   :  { %v567_v16 = vadd.f32 %v566_v14, %v283_v4  ;;  %v2400_v19 = vadd.f32 %v1640_v17, %v578_v12  ;;  %v581_v20 = vadd.f32 %v1849_v10, %v575_v13  ;;  %v605_v30 = vmul.f32 %v2402_v22, %v2402_v22  ;;  %v2047_v4 = vld [vmem:[#allocation6 + $0x78] sm:$0xff]  }
 0x125   :  { %1910 = vmatprep.subr.bf16.mxu0 %v2047_v4 }
 0x126   :  { %v579_v21 = vadd.f32 %v567_v16, %v461_v18  ;;  %v603_v24 = vmul.f32 %v2400_v19, %v2400_v19  ;;  %v2408_v25 = vadd.f32 %v1640_v17, %v581_v20  ;;  %1911 = vmatpush3.bf16.msra.mxu0 %v2047_v4  ;;  %v2154_v16 = vmov 1966171168   ;;  %v2062_v4 = vld [vmem:[#allocation6 + $0x38] sm:$0xff]  }
 0x127   :  { %1912 = vmatprep.subr.bf16.mxu0 %v2048_v5  ;;  %v717_v18 = vlaneseq }
 0x128   :  { %v2404_v23 = vadd.f32 %v1640_v17, %v579_v21  ;;  %v606_v33 = vmul.f32 %v2408_v25, %v2408_v25  ;;  %v715_v17 = vunpack.c.l.s4 %v2154_v16 }
 0x129   :  { %v2429_v21 = vshrl.u32 %v717_v18, 7 }
 0x12a   :  { %v594_v26 = vadd.f32 %v2404_v23, %v2400_v19  ;;  %v604_v28 = vmul.f32 %v2404_v23, %v2404_v23  ;;  %1913 = vmatpush3.bf16.msra.mxu0 %v2048_v5  ;;  %v716_v20 = vunpack.c.0.s8 %v715_v17  ;;  %v2064_v5 = vld [vmem:[#allocation6 + $0x88] sm:$0xff]  }
 0x12b   :  { %1914 = vmatprep.subr.bf16.mxu0 %v2049_v7 }
 0x12c   :  { %v595_v29 = vadd.f32 %v594_v26, %v2402_v22  ;;  %v607_v31 = vadd.f32 %v604_v28, %v603_v24  ;;  %v2432_v24 = vsub.s32 %v716_v20, %v2429_v21 }
 0x12e   :  { %v596_v32 = vadd.f32 %v595_v29, %v2408_v25  ;;  %v608_v35 = vadd.f32 %v607_v31, %v605_v30  ;;  %1915 = vmatpush3.bf16.msra.mxu0 %v2049_v7  ;;  %v592_v29 = vld [vmem:[%s2556_s3] sm:$0x1]  ;;  %v825_v7 = vsub.s32 1, %v2429_v21 }
 0x130   :  { %v597_v36 = vrot.slane %v596_v32, 4  ;;  %v609_v37 = vadd.f32 %v608_v35, %v606_v33 }
 0x132   :  { %v598_v38 = vadd.f32 %v597_v36, %v596_v32  ;;  %v610_v39 = vrot.slane %v609_v37, 4  ;;  %v593_v32 = vld [vmem:[%s2557_s4] sm:$0x1]  ;;  %v2443_v36 = vsub.s32 0, %v2429_v21  ;;  %v2078_v21 = vld [vmem:[%s2553_s0 + $0x8] sm:$0xff] }
 0x134   :  { %v599_v40 = vrot.slane %v598_v38, 2  ;;  %v611_v41 = vadd.f32 %v610_v39, %v609_v37 }
 0x136   :  { %v600_v42 = vadd.f32 %v599_v40, %v598_v38  ;;  %v612_v43 = vrot.slane %v611_v41, 2  ;;  %v2051_v40 = vld [vmem:[#allocation6 + $0x60] sm:$0xff]  }
 0x137   :  { %1916 = vmatprep.subr.bf16.mxu0 %v2051_v40 }
 0x138   :  { %v601_v44 = vrot.slane %v600_v42, 1  ;;  %v613_v45 = vadd.f32 %v612_v43, %v611_v41  ;;  %v2052_v41 = vld [vmem:[#allocation6 + $0xb0] sm:$0xff]   ;;  %1917 = vmatpush3.bf16.msra.mxu0 %v2051_v40  ;;  %v2054_v43 = vld [vmem:[#allocation6 + $0xa8] sm:$0xff]  }
 0x13a   :  { %v614_v46 = vrot.slane %v613_v45, 1  ;;  %v602_v62 = vadd.f32 %v601_v44, %v600_v42  ;;  %v2053_v42 = vld [vmem:[#allocation6 + $0x58] sm:$0xff]   ;;  %v2055_v44 = vld [vmem:[#allocation6 + $0x50] sm:$0xff]  }
 0x13b   :  { %1918 = vmatprep.subr.bf16.mxu0 %v2053_v42 }
 0x13c   :  { %v615_v63 = vadd.f32 %v614_v46, %v613_v45  ;;  %1919 = vmatpush3.bf16.msra.mxu0 %v2053_v42  ;;  %v2056_v45 = vld [vmem:[#allocation6 + $0xa0] sm:$0xff]   ;;  %v2057_v46 = vld [vmem:[#allocation6 + $0x48] sm:$0xff]  }
 0x13d   :  { %1920 = vmatprep.subr.bf16.mxu0 %v2055_v44 }
 0x13e   :  { %v617_v0 = vsel %vm616_vm7, %v602_v62, %v615_v63  ;;  %v2058_v62 = vld [vmem:[#allocation6 + $0x98] sm:$0xff]   ;;  %v2059_v63 = vld [vmem:[#allocation6 + $0x40] sm:$0xff]  }
 0x13f   :  { %1903 = vmatmul.mubr.f32.vlgmr.msra.gmra.mxu1 %v617_v0  ;;  %v2060_v0 = vld [vmem:[#allocation6 + $0x90] sm:$0xff]  }
 0x140   :  { %1907 = vmatprep.mubr.msk.f32.mxu1 %vm2153_vm6, %v2152_v47  ;;  %1906 = vmatpush3.msra.mxu1 %v2426_v2 }
 0x141   :  { %1930 = vmatprep.subr.bf16.mxu1 %v2050_v6  ;;  %1921 = vmatpush3.bf16.msra.mxu0 %v2055_v44 }
 0x142   :  { %1922 = vmatprep.subr.bf16.mxu0 %v2057_v46 }
 0x145   :  { %1923 = vmatpush3.bf16.msra.mxu0 %v2057_v46 }
 0x146   :  { %1924 = vmatprep.subr.bf16.mxu0 %v2059_v63 }
 0x149   :  { %1925 = vmatpush3.bf16.msra.mxu0 %v2059_v63  ;;  %v2065_v63 = vld [vmem:[#allocation6 + $0x30] sm:$0xff]  }
 0x14a   :  { %1950 = vmatprep.subr.bf16.mxu0 %v2062_v4 }
 0x1ff   :  { %v700_v8 = vpop.f32.mrf.mxu1 }
 0x200   :  { %v704_v9 = vmul.f32 0.001953125, %v700_v8 }
 0x201   :  { %v1904_v10 = vpop.f32.mrf.mxu1 }
 0x202   :  { %v705_v11 = vmul.f32 %v704_v9, %v704_v9 }
 0x204   :  { %v707_v12 = vrot.slane %v705_v11, 7 }
 0x206   :  { %v709_v13 = vsub.f32 %v704_v9, %v707_v12 }
 0x208   :  { %v710_v14 = vmax.f32 %v709_v13, 0.0 }
 0x20a   :  { %v711_v15 = vadd.f32 1e-05, %v710_v14 }
 0x20c   :  { %2073 = vrsqrt.f32 %v711_v15 }
 0x219   :  { %v2074_v26 = vpop.eup %2073 }
 0x21a   :  { %v720_v28 = vrot.slane %v2074_v26, %v2432_v24 }
 0x21c   :  { %v721_v30 = vcombine.high %v720_v28, %v720_v28 }
 0x21e   :  { %v728_v31 = vrot.slane %v721_v30, %v2432_v24 }
 0x220   :  { %v730_v33 = vmul.f32 %v728_v31, %v592_v29 }
 0x222   :  { %v731_v35 = vmul.f32 %v730_v33, %v704_v9 }
 0x224   :  { %v732_v37 = vsub.f32 %v593_v32, %v731_v35  ;;  %v856_v32 = vld [vmem:[#allocation2 + $0x4] sm:$0x8] }
 0x226   :  { %v737_v38 = vrot.slane %v732_v37, %v2443_v36 }
 0x228   :  { %v739_v39 = vsel %vm616_vm7, %v730_v33, %v737_v38 }
 0x229   :  { %1908 = vmatmul.mubr.msk.f32.vlgmr.msra.gmra.mxu1 %vm741_vm8, %v739_v39  ;;  %v1049_v39 = vld [vmem:[#allocation2 + $0x10] sm:$0x1] }
 0x22a   :  { %1931 = vmatpush3.bf16.msra.mxu1 %v2050_v6  ;;  %v2066_v6 = vld [vmem:[#allocation6 + $0x80] sm:$0xff]  }
 0x22b   :  { %1932 = vmatprep.subr.bf16.mxu1 %v2052_v41 }
 0x22e   :  { %1933 = vmatpush3.bf16.msra.mxu1 %v2052_v41 }
 0x22f   :  { %1934 = vmatprep.subr.bf16.mxu1 %v2054_v43 }
 0x232   :  { %1935 = vmatpush3.bf16.msra.mxu1 %v2054_v43 }
 0x233   :  { %1936 = vmatprep.subr.bf16.mxu1 %v2056_v45 }
 0x236   :  { %1937 = vmatpush3.bf16.msra.mxu1 %v2056_v45 }
 0x237   :  { %1938 = vmatprep.subr.bf16.mxu1 %v2058_v62 }
 0x23a   :  { %1939 = vmatpush3.bf16.msra.mxu1 %v2058_v62 }
 0x23b   :  { %1940 = vmatprep.subr.bf16.mxu1 %v2060_v0 }
 0x23e   :  { %1941 = vmatpush3.bf16.msra.mxu1 %v2060_v0 }
 0x23f   :  { %1942 = vmatprep.subr.bf16.mxu1 %v2064_v5 }
 0x242   :  { %1943 = vmatpush3.bf16.msra.mxu1 %v2064_v5 }
 0x243   :  { %1944 = vmatprep.subr.bf16.mxu1 %v2066_v6 }
 0x246   :  { %1945 = vmatpush3.bf16.msra.mxu1 %v2066_v6 }
 0x247   :  { %1970 = vmatprep.subr.mxu1 %v2152_v47 }
 0x2e9   :  { %v811_v8 = vpop.f32.mrf.mxu1 }
 0x2ea   :  { %v818_v9 = vrot.slane %v811_v8, %v2443_v36  ;;  %v826_v10 = vrot.slane %v811_v8, %v825_v7  ;;  %v1073_v8 = vshll.u32 %v1049_v39, 16 }
 0x2eb   :  { %v1909_v11 = vpop.f32.mrf.mxu1 }
 0x2ec   :  { %v819_v12 = vmul.f32 %v818_v9, %v2400_v19  ;;  %v820_v13 = vmul.f32 %v818_v9, %v2404_v23  ;;  %v821_v14 = vmul.f32 %v818_v9, %v2402_v22  ;;  %v822_v15 = vmul.f32 %v818_v9, %v2408_v25 }
 0x2ed   :  { %v863_v19 = vshrl.u32 %v856_v32, 16 }
 0x2ee   :  { %v827_v16 = vadd.f32 %v826_v10, %v819_v12  ;;  %v828_v17 = vadd.f32 %v826_v10, %v820_v13  ;;  %v829_v18 = vadd.f32 %v826_v10, %v821_v14  ;;  %v830_v20 = vadd.f32 %v826_v10, %v822_v15  ;;  %v1052_v14 = vld [vmem:[#allocation2 + $0x28] sm:$0x1] }
 0x2ef   :  { %v1646_v42 = vrot.slane %v863_v19, 11 }
 0x2f0   :  { %v831_v26 = vmax.f32 %v827_v16, 0.0  ;;  %v832_v28 = vmax.f32 %v828_v17, 0.0  ;;  %v833_v30 = vmax.f32 %v829_v18, 0.0  ;;  %v834_v29 = vmax.f32 %v830_v20, 0.0 }
 0x2f2   :  { %v1701_v31 = vpack.c.bf16 %v832_v28, %v831_v26  ;;  %v1706_v33 = vpack.c.bf16 %v834_v29, %v833_v30  ;;  %v2067_v30 = vld [vmem:[#allocation6 + $0x28] sm:$0xff]  }
 0x2f4   :  { %1710 = vst [vmem:[#allocation2 + $0x8] sm:$0xff] %v1701_v31   ;;  %1711 = vst [vmem:[#allocation2 + $0x20] sm:$0xff] %v1706_v33  }
 0x2fb   :  { %v857_v35 = vld [vmem:[#allocation2 + $0x8] sm:$0xf]  ;;  %v858_v23 = vld [vmem:[#allocation2 + $0xc] sm:$0xf]  ;;  %v2457_v37 = vld [vmem:[#allocation2 + $0x20] sm:$0xf] }
 0x2fc   :  { %v868_v22 = vshrl.u32 %v857_v35, 16  ;;  %v877_v25 = vshrl.u32 %v858_v23, 16  ;;  %v2459_v38 = vld [vmem:[#allocation2 + $0x24] sm:$0xf]  ;;  %v871_v40 = vshll.u32 %v857_v35, 16  ;;  %v1648_v41 = vcombine.low %v857_v35, %v858_v23 }
 0x2fd   :  { %v1047_v43 = vld [vmem:[#allocation2 + $0x8] sm:$0xf]  ;;  %v880_v46 = vshll.u32 %v858_v23, 16  ;;  %v1649_v62 = vcombine.low %v2457_v37, %v2459_v38  ;;  %v1048_v0 = vld [vmem:[#allocation2 + $0xc] sm:$0xf] }
 0x2fe   :  { %v870_v44 = vrot.slane %v868_v22, 7  ;;  %v879_v45 = vrot.slane %v877_v25, 7  ;;  %1926 = vmatprep.mubr.bf16.mxu0 %v1648_v41  ;;  %v1054_v5 = vshrl.u32 %v1047_v43, 16  ;;  %v1057_v6 = vshll.u32 %v1047_v43, 16  ;;  %v1050_v9 = vld [vmem:[#allocation2 + $0x20] sm:$0xf] }
 0x2ff   :  { %1927 = vmatmul.mubr.bf16.vlgmr.msra.gmra.mxu0 %v1649_v62  ;;  %v1063_v13 = vshll.u32 %v1048_v0, 16  ;;  %v1067_v17 = vshrl.u32 %v1048_v0, 16  ;;  %v1051_v18 = vld [vmem:[#allocation2 + $0x24] sm:$0xf]  ;;  %v1078_v20 = vshrl.u32 %v1050_v9, 16  ;;  %v1081_v31 = vshll.u32 %v1050_v9, 16 }
 0x300   :  { %v873_v10 = vor.u32 %v871_v40, %v870_v44  ;;  %v875_v11 = vrot.slane %v870_v44, 4  ;;  %v882_v12 = vor.u32 %v880_v46, %v879_v45  ;;  %1951 = vmatpush3.bf16.msra.mxu0 %v2062_v4  ;;  %v1056_v15 = vrot.slane %v1054_v5, 4  ;;  %v2068_v45 = vld [vmem:[#allocation6 + $0x20] sm:$0xff]  }
 0x301   :  { %v1059_v16 = vrot.slane %v1057_v6, 5  ;;  %1952 = vmatprep.subr.bf16.mxu0 %v2065_v63  ;;  %v1065_v29 = vrot.slane %v1063_v13, 5  ;;  %v1069_v19 = vrot.slane %v1067_v17, 4  ;;  %v1080_v35 = vrot.slane %v1078_v20, 4  ;;  %v859_v17 = vld [vmem:[#allocation2 + $0x1c] sm:$0x8] }
 0x302   :  { %v874_v26 = vsel %vm2250_vm4, %v1646_v42, %v873_v10  ;;  %v883_v28 = vsel %vm2250_vm4, %v875_v11, %v882_v12  ;;  %v1083_v4 = vrot.slane %v1081_v31, 5  ;;  %v1087_v23 = vshll.u32 %v1051_v18, 16  ;;  %v2069_v11 = vld [vmem:[#allocation6 + $0x18] sm:$0xff]  }
 0x303   :  { %v1668_v33 = vcombine.low %v874_v26, %v883_v28  ;;  %v1060_v32 = vor.u32 %v1059_v16, %v1056_v15  ;;  %v1091_v22 = vshrl.u32 %v1051_v18, 16  ;;  %v1097_v25 = vshll.u32 %v1052_v14, 16  ;;  %v2070_v14 = vld [vmem:[#allocation6 + $0x10] sm:$0xff]  }
 0x304   :  { %1953 = vmatpush3.bf16.msra.mxu0 %v2065_v63  ;;  %v1070_v40 = vor.u32 %v1069_v19, %v1065_v29  ;;  %v1075_v41 = vrot.slane %v1073_v8, 5  ;;  %v1084_v42 = vor.u32 %v1083_v4, %v1080_v35  ;;  %v1089_v43 = vrot.slane %v1087_v23, 5 }
 0x305   :  { %1966 = vmatprep.mubr.bf16.mxu0 %v1668_v33  ;;  %v1061_v39 = vrot.slane %v1060_v32, 4  ;;  %1954 = vmatprep.subr.bf16.mxu0 %v2067_v30  ;;  %v1093_v44 = vrot.slane %v1091_v22, 4  ;;  %v1099_v6 = vrot.slane %v1097_v25, 5  ;;  %v890_v15 = vshrl.u32 %v2457_v37, 16 }
 0x306   :  { %v1071_v62 = vrot.slane %v1070_v40, 4  ;;  %v1085_v0 = vrot.slane %v1084_v42, 4  ;;  %v899_v16 = vshrl.u32 %v2459_v38, 16  ;;  %v885_v26 = vshrl.u32 %v859_v17, 16 }
 0x307   :  { %v1066_v46 = vsel %vm2256_vm5, %v1061_v39, %v1065_v29  ;;  %v1094_v5 = vor.u32 %v1093_v44, %v1089_v43  ;;  %v892_v18 = vrot.slane %v890_v15, 7  ;;  %v893_v28 = vshll.u32 %v2457_v37, 16 }
 0x308   :  { %v1076_v9 = vsel %vm2256_vm5, %v1071_v62, %v1075_v41  ;;  %1955 = vmatpush3.bf16.msra.mxu0 %v2067_v30  ;;  %v1090_v8 = vsel %vm2256_vm5, %v1085_v0, %v1089_v43  ;;  %v901_v20 = vrot.slane %v899_v16, 7  ;;  %v2072_v30 = vld [vmem:[#allocation6] sm:$0xff]   ;;  %v1647_v29 = vrot.slane %v885_v26, 11 }
 0x309   :  { %v1658_v63 = vcombine.low %v1066_v46, %v1076_v9  ;;  %v1095_v10 = vrot.slane %v1094_v5, 4  ;;  %1956 = vmatprep.subr.bf16.mxu0 %v2068_v45  ;;  %v897_v31 = vrot.slane %v892_v18, 4 }
 0x30b   :  { %1946 = vmatprep.mubr.bf16.mxu1 %v1658_v63  ;;  %v1100_v12 = vsel %vm2256_vm5, %v1095_v10, %v1099_v6 }
 0x30c   :  { %v1659_v13 = vcombine.low %v1090_v8, %v1100_v12  ;;  %1957 = vmatpush3.bf16.msra.mxu0 %v2068_v45 }
 0x30d   :  { %1958 = vmatprep.subr.bf16.mxu0 %v2069_v11 }
 0x30e   :  { %1947 = vmatmul.mubr.bf16.vlgmr.msra.gmra.mxu1 %v1659_v13 }
 0x30f   :  { %1971 = vmatpush3.msra.mxu1 %v2286_v27  ;;  %2002 = vmatprep.mubr.msk.f32.mxu1 %vm2153_vm6, %v2152_v47  ;;  %v902_v27 = vshll.u32 %v2459_v38, 16 }
 0x310   :  { %1959 = vmatpush3.bf16.msra.mxu0 %v2069_v11  ;;  %1972 = vmatprep.subr.mxu1 %v2152_v47 }
 0x311   :  { %1960 = vmatprep.subr.bf16.mxu0 %v2070_v14  ;;  %1973 = vmatpush3.msra.mxu1 %v2293_v34  ;;  %v895_v34 = vor.u32 %v893_v28, %v892_v18  ;;  %v904_v33 = vor.u32 %v902_v27, %v901_v20 }
 0x312   :  { %1974 = vmatprep.subr.mxu1 %v2152_v47 }
 0x313   :  { %1975 = vmatpush3.msra.mxu1 %v2300_v48  ;;  %v896_v48 = vsel %vm2250_vm4, %v1647_v29, %v895_v34 }
 0x314   :  { %1961 = vmatpush3.bf16.msra.mxu0 %v2070_v14  ;;  %1976 = vmatprep.subr.mxu1 %v2152_v47 }
 0x315   :  { %1962 = vmatprep.subr.bf16.mxu0 %v2071_v3  ;;  %1977 = vmatpush3.msra.mxu1 %v2307_v49  ;;  %v905_v49 = vsel %vm2250_vm4, %v897_v31, %v904_v33 }
 0x316   :  { %1978 = vmatprep.subr.mxu1 %v2152_v47 }
 0x317   :  { %1979 = vmatpush3.msra.mxu1 %v2314_v50  ;;  %v1669_v50 = vcombine.low %v896_v48, %v905_v49 }
 0x318   :  { %1963 = vmatpush3.bf16.msra.mxu0 %v2071_v3  ;;  %1980 = vmatprep.subr.mxu1 %v2152_v47 }
 0x319   :  { %1964 = vmatprep.subr.bf16.mxu0 %v2072_v30  ;;  %1981 = vmatpush3.msra.mxu1 %v2321_v51 }
 0x31a   :  { %1982 = vmatprep.subr.mxu1 %v2152_v47 }
 0x31b   :  { %1983 = vmatpush3.msra.mxu1 %v2328_v52 }
 0x31c   :  { %1965 = vmatpush3.bf16.msra.mxu0 %v2072_v30  ;;  %1984 = vmatprep.subr.mxu1 %v2152_v47 }
 0x31d   :  { %1985 = vmatpush3.msra.mxu1 %v2335_v53  ;;  %2005 = vmatprep.subr.mxu0 %v2152_v47 }
 0x31e   :  { %1986 = vmatprep.subr.mxu1 %v2152_v47 }
 0x31f   :  { %1967 = vmatmul.mubr.bf16.vlgmr.msra.gmra.mxu0 %v1669_v50  ;;  %1987 = vmatpush3.msra.mxu1 %v2341_v54  ;;  %v1341_v50 = vld [vmem:[%s2560_s7] sm:$0x1]  ;;  %s2155_s7 = smov [#allocation8]  }
 0x320   :  { %1988 = vmatprep.subr.mxu1 %v2152_v47  ;;  %2006 = vmatpush3.msra.mxu0 %v2426_v2 }
 0x321   :  { %1989 = vmatpush3.msra.mxu1 %v2347_v55  ;;  %2007 = vmatprep.mubr.msk.f32.mxu0 %vm2153_vm6, %v2152_v47 }
 0x322   :  { %1990 = vmatprep.subr.mxu1 %v2152_v47 }
 0x323   :  { %1991 = vmatpush3.msra.mxu1 %v2356_v56 }
 0x324   :  { %1992 = vmatprep.subr.mxu1 %v2152_v47 }
 0x325   :  { %1993 = vmatpush3.msra.mxu1 %v2363_v57 }
 0x326   :  { %1994 = vmatprep.subr.mxu1 %v2152_v47 }
 0x327   :  { %1995 = vmatpush3.msra.mxu1 %v2370_v58 }
 0x328   :  { %1996 = vmatprep.subr.mxu1 %v2152_v47 }
 0x329   :  { %1997 = vmatpush3.msra.mxu1 %v2377_v59 }
 0x32a   :  { %1998 = vmatprep.subr.mxu1 %v2152_v47 }
 0x32b   :  { %1999 = vmatpush3.msra.mxu1 %v2384_v60 }
 0x32c   :  { %2000 = vmatprep.subr.mxu1 %v2152_v47 }
 0x32d   :  { %2001 = vmatpush3.msra.mxu1 %v2391_v61  ;;  %v1678_v61 = vld [vmem:[%s2559_s6] ss:$0 sm:$0xff] }
 0x3bf   :  { %v1928_v1 = vpop.f32.mrf.mxu0 }
 0x3c1   :  { %v1032_v51 = vpop.f32.mrf.mxu0 }
 0x3c3   :  { %v1929_v52 = vpop.f32.mrf.mxu0 }
 0x3c5   :  { %v1035_v54 = vpop.f32.mrf.mxu0 }
 0x3ce   :  { %v1948_v53 = vpop.f32.mrf.mxu1 }
 0x3d0   :  { %v1207_v55 = vpop.f32.mrf.mxu1 }
 0x3d2   :  { %v1949_v37 = vpop.f32.mrf.mxu1 }
 0x3d4   :  { %v1210_v47 = vpop.f32.mrf.mxu1 }
 0x3df   :  { %v1968_v56 = vpop.f32.mrf.mxu0 }
 0x3e0   :  { %v1321_v58 = vadd.f32 %v1968_v56, %v1928_v1 }
 0x3e1   :  { %v1312_v57 = vpop.f32.mrf.mxu0 }
 0x3e2   :  { %v1313_v2 = vadd.f32 %v1312_v57, %v1032_v51  ;;  %v1329_v60 = vadd.f32 %v1948_v53, %v1321_v58 }
 0x3e3   :  { %v1969_v59 = vpop.f32.mrf.mxu0 }
 0x3e4   :  { %v1327_v38 = vadd.f32 %v1313_v2, %v1207_v55  ;;  %v1324_v32 = vadd.f32 %v1969_v59, %v1929_v52  ;;  %v1339_v25 = vadd.f32 %v1678_v61, %v1329_v60  ;;  %v1342_v52 = vld [vmem:[%s2561_s8] sm:$0x1]  ;;  %s1591_s8 = sshll.u32 %s2155_s7, 4  ;;  %s1592_s8 = int_to_ptr.vmem [resolvable:$true] %s1591_s8 }
 0x3e5   :  { %v1315_v19 = vpop.f32.mrf.mxu0  ;;  %s2121_s22 = scalar_lea.vmem %s1592_s8, 512  ;;  %p2126_p11 = scmp.lt.s32.totalorder %s1592_s8, %s1592_s8 }
 0x3e6   :  { %v1316_v35 = vadd.f32 %v1315_v19, %v1035_v54  ;;  %v1337_v4 = vadd.f32 %v1678_v61, %v1327_v38  ;;  %v1330_v23 = vadd.f32 %v1949_v37, %v1324_v32  ;;  %v1354_v44 = vmul.f32 %v1339_v25, %v1339_v25  ;;  %p2122_p10 = scmp.ne.s32.totalorder %s1592_s8, %s2121_s22  ;;  %p2127_p12 = scmp.lt.s32.totalorder %s2121_s22, %s2121_s22 }
 0x3e8   :  { %v1328_v22 = vadd.f32 %v1316_v35, %v1210_v47  ;;  %v1352_v40 = vmul.f32 %v1337_v4, %v1337_v4  ;;  %v1340_v41 = vadd.f32 %v1678_v61, %v1330_v23  ;;  %p2128_p13 = por %p2127_p12, %p2126_p11 }
 0x3ea   :  { %v1338_v39 = vadd.f32 %v1678_v61, %v1328_v22  ;;  %v1355_v62 = vmul.f32 %v1340_v41, %v1340_v41  ;;  %v2077_v61 = vld [vmem:[%s2553_s0] sm:$0xff]  ;;  %v2080_v22 = vld [vmem:[%s2553_s0 + $0x18] sm:$0xff]  ;;  %p2129_p0 = pnand %p2128_p13, %p2122_p10 }
 0x3ec   :  { %v1343_v42 = vadd.f32 %v1338_v39, %v1337_v4  ;;  %v1353_v43 = vmul.f32 %v1338_v39, %v1338_v39 }
 0x3ee   :  { %v1344_v45 = vadd.f32 %v1343_v42, %v1339_v25  ;;  %v1356_v46 = vadd.f32 %v1353_v43, %v1352_v40 }
 0x3f0   :  { %v1345_v0 = vadd.f32 %v1344_v45, %v1340_v41  ;;  %v1357_v5 = vadd.f32 %v1356_v46, %v1354_v44 }
 0x3f2   :  { %v1346_v6 = vrot.slane %v1345_v0, 4  ;;  %v1358_v9 = vadd.f32 %v1357_v5, %v1355_v62 }
 0x3f4   :  { %v1347_v63 = vadd.f32 %v1346_v6, %v1345_v0  ;;  %v1359_v8 = vrot.slane %v1358_v9, 4 }
 0x3f6   :  { %v1348_v10 = vrot.slane %v1347_v63, 2  ;;  %v1360_v11 = vadd.f32 %v1359_v8, %v1358_v9 }
 0x3f8   :  { %v1349_v12 = vadd.f32 %v1348_v10, %v1347_v63  ;;  %v1361_v13 = vrot.slane %v1360_v11, 2 }
 0x3fa   :  { %v1350_v14 = vrot.slane %v1349_v12, 1  ;;  %v1362_v15 = vadd.f32 %v1361_v13, %v1360_v11 }
 0x3fc   :  { %v1363_v16 = vrot.slane %v1362_v15, 1  ;;  %v1351_v17 = vadd.f32 %v1350_v14, %v1349_v12 }
 0x3fe   :  { %v1364_v3 = vadd.f32 %v1363_v16, %v1362_v15 }
 0x400   :  { %v1365_v18 = vsel %vm616_vm7, %v1351_v17, %v1364_v3 }
 0x401   :  { %2003 = vmatmul.mubr.f32.vlgmr.msra.gmra.mxu1 %v1365_v18 }
 0x4c1   :  { %v1448_v20 = vpop.f32.mrf.mxu1 }
 0x4c2   :  { %v1452_v26 = vmul.f32 0.001953125, %v1448_v20 }
 0x4c3   :  { %v2004_v28 = vpop.f32.mrf.mxu1 }
 0x4c4   :  { %v1453_v27 = vmul.f32 %v1452_v26, %v1452_v26 }
 0x4c6   :  { %v1455_v30 = vrot.slane %v1453_v27, 7 }
 0x4c8   :  { %v1457_v29 = vsub.f32 %v1452_v26, %v1455_v30 }
 0x4ca   :  { %v1458_v34 = vmax.f32 %v1457_v29, 0.0 }
 0x4cc   :  { %v1459_v31 = vadd.f32 1e-05, %v1458_v34 }
 0x4ce   :  { %2075 = vrsqrt.f32 %v1459_v31 }
 0x4db   :  { %v2076_v33 = vpop.eup %2075 }
 0x4dc   :  { %v1468_v48 = vrot.slane %v2076_v33, %v2432_v24 }
 0x4de   :  { %v1469_v49 = vcombine.high %v1468_v48, %v1468_v48 }
 0x4e0   :  { %v1476_v1 = vrot.slane %v1469_v49, %v2432_v24 }
 0x4e2   :  { %v1478_v51 = vmul.f32 %v1476_v1, %v1341_v50 }
 0x4e4   :  { %v1479_v53 = vmul.f32 %v1478_v51, %v1452_v26 }
 0x4e6   :  { %v1480_v54 = vsub.f32 %v1342_v52, %v1479_v53 }
 0x4e8   :  { %v1485_v55 = vrot.slane %v1480_v54, %v2443_v36 }
 0x4ea   :  { %v1487_v56 = vsel %vm616_vm7, %v1478_v51, %v1485_v55 }
 0x4eb   :  { %2008 = vmatmul.mubr.msk.f32.vlgmr.msra.gmra.mxu0 %vm741_vm8, %v1487_v56 }
 0x5ab   :  { %v1558_v57 = vpop.f32.mrf.mxu0 }
 0x5ac   :  { %v1565_v58 = vrot.slane %v1558_v57, %v2443_v36  ;;  %v1573_v2 = vrot.slane %v1558_v57, %v825_v7  ;;  %v2079_v7 = vld [vmem:[%s2553_s0 + $0x10] sm:$0xff] }
 0x5ad   :  { %v2009_v24 = vpop.f32.mrf.mxu0 }
 0x5ae   :  { %v1566_v37 = vmul.f32 %v1565_v58, %v1337_v4  ;;  %v1567_v59 = vmul.f32 %v1565_v58, %v1338_v39  ;;  %v1568_v38 = vmul.f32 %v1565_v58, %v1339_v25  ;;  %v1569_v32 = vmul.f32 %v1565_v58, %v1340_v41 }
 0x5b0   :  { %v1574_v19 = vadd.f32 %v1573_v2, %v1566_v37  ;;  %v1575_v60 = vadd.f32 %v1573_v2, %v1567_v59  ;;  %v1576_v35 = vadd.f32 %v1573_v2, %v1568_v38  ;;  %v1577_v47 = vadd.f32 %v1573_v2, %v1569_v32 }
 0x5b2   :  { %v1578_v23 = vadd.f32 %v2077_v61, %v1574_v19  ;;  %v1579_v36 = vadd.f32 %v2078_v21, %v1575_v60  ;;  %v1580_v4 = vadd.f32 %v2079_v7, %v1576_v35  ;;  %v1581_v25 = vadd.f32 %v2080_v22, %v1577_v47 }
 0x5b4   :  { %1582 = vst [vmem:[#allocation8] sm:$0xff] %v1578_v23  ;;  %1583 = vst [vmem:[#allocation8 + $0x8] sm:$0xff] %v1579_v36 }
 0x5b5   :  { %1584 = vst [vmem:[#allocation8 + $0x10] sm:$0xff] %v1580_v4  ;;  %1585 = vst [vmem:[#allocation8 + $0x18] sm:$0xff] %v1581_v25 }
 0x5b6   :  { %2132 = shalt.err (!%p2129_p0)
}
 0x5b7   :  { %s2156_s23 = smov 128   ;;  %s2157_s24 = smov 8  }
 0x5b8   :  { %1597 = dma.vmem_to_hbm [thread:$0]  %s1592_s8, 512, %s2564_s11, [#allocation5], %s2156_s23, %s2156_s23, %s2157_s24  }
 0x5b9   :  { %2145 = dma.done.wait [#allocation5], 512  }
 0x5ba   :  { %2146 = vsyncadd [#allocation5], 4294966784 }
 0x5bb   :  { %1601 = vsyncpa [#allocation4], 1 }
 0x5bc   :  { %1602 = vsyncpa [#allocation7], 1 }
 0x5bd   :  { %1603 = vsyncpa [#allocation5], 1 }

</bundles_post_ra>
